<compile_context>
chip_gen: v5e
topology: v5e:2x2
jax: 0.10.0
libtpu: 0.0.40
codegen_flags: <defaults>
</compile_context>

<pallas_src>
import functools

import jax
import jax.numpy as jnp
from jax.experimental import pallas as pl
from jax.experimental.pallas import tpu as pltpu


def _round_up(a: int, m: int) -> int:
    return (a + m - 1) // m * m


def mlp_kernel(x_ref, w1_ref, b1_ref, w2_ref, b2_ref, o_ref):
    # x arrives as f32 straight from HBM (no extra wrapper cast pass); cast to
    # bf16 on the VPU -- free slack since this kernel is HBM-DMA bound.
    x = x_ref[...].astype(jnp.bfloat16)
    # First linear layer: bf16 operands, f32 MXU accumulation.
    h = jnp.dot(x, w1_ref[...], preferred_element_type=jnp.float32)
    # Bias + ReLU in f32 on the VPU (v5e has no bf16 VPU; b1 broadcasts rows).
    h = jnp.maximum(h + b1_ref[...], 0.0)
    # Second linear layer, then bias, stored at the true class width.
    out = jnp.dot(h.astype(jnp.bfloat16), w2_ref[...],
                  preferred_element_type=jnp.float32)
    o_ref[...] = (out + b2_ref[...]).astype(o_ref.dtype)


@functools.partial(jax.jit, static_argnames=("block_b",))
def neural_net2_forward(x, w1, b1, w2, b2, *, block_b=2048):
    """x: [B, input_size]; w1: [input_size, hidden]; b1: [hidden];
    w2: [hidden, num_classes]; b2: [num_classes] -> [B, num_classes] (f32)."""
    B, in_size = x.shape
    hidden = w1.shape[1]
    num_classes = w2.shape[1]

    # ---- pad the *hidden* dim (weights / b1 only) up to a multiple of 128 so
    # h, W1's N dim and W2's K dim are lane-dense.  x's in_size is NOT padded
    # (that would inflate the dominant x HBM read).  Zero padding is exact:
    # padded hidden units are relu(0 + 0) = 0 and hit zero rows of W2.
    hidden_p = _round_up(hidden, 128)
    if hidden_p != hidden:
        w1p = jnp.zeros((in_size, hidden_p), w1.dtype).at[:, :hidden].set(w1)
        b1p = jnp.zeros((1, hidden_p), jnp.float32).at[0, :hidden].set(
            b1.astype(jnp.float32))
        w2p = jnp.zeros((hidden_p, num_classes), w2.dtype).at[:hidden, :].set(w2)
    else:
        w1p = w1
        b1p = b1.astype(jnp.float32).reshape(1, hidden_p)
        w2p = w2
    b2p = b2.astype(jnp.float32).reshape(1, num_classes)

    # Weights in bf16 (halves resident VMEM + weight HBM read); biases stay f32.
    w1b = w1p.astype(jnp.bfloat16)
    w2b = w2p.astype(jnp.bfloat16)

    # ---- batch tiling: x stays f32 (8-row sublane tile); no jnp.pad of x --
    # the grid uses cdiv and Pallas masks the final partial tile's OOB rows.
    tb = max(8, min(block_b, _round_up(B, 8)))
    if tb >= B and B > 8:
        # Ensure >= 2 grid steps: lets v7x's second TensorCore share the batch
        # and gives v5e/v6e something to pipeline the x/out DMAs against.
        tb = _round_up(pl.cdiv(B, 2), 8)
    n_blocks = pl.cdiv(B, tb)

    cost = pl.CostEstimate(
        flops=2 * B * (in_size * hidden_p + hidden_p * num_classes),
        transcendentals=0,
        bytes_accessed=(B * in_size * 4                 # x read once, f32
                        + w1b.size * 2 + w2b.size * 2   # bf16 weights, once
                        + b1p.size * 4 + b2p.size * 4
                        + B * num_classes * 4),         # unpadded f32 output
    )

    # Explicit VMEM budget: resident weights/biases + double-buffered x / out
    # tiles + the f32 hidden intermediate.  Capped at 48 MiB (v7x: 64 MiB/TC).
    # TODO(synk): if the weight-resident budget ever exceeds ~48 MiB, switch to
    # tiling in_size/hidden with an extra "arbitrary" reduction grid axis.
    vmem_budget = (w1b.size * 2 + w2b.size * 2 + b1p.size * 4 + b2p.size * 4
                   + 2 * tb * in_size * 4                        # x tiles (f32)
                   + 2 * tb * _round_up(num_classes, 128) * 4    # out tiles
                   + 2 * tb * hidden_p * 4)                      # h (+bf16 copy)
    vmem_limit = int(min(max(2 * vmem_budget, 32 << 20), 48 << 20))

    return pl.pallas_call(
        mlp_kernel,
        out_shape=jax.ShapeDtypeStruct((B, num_classes), jnp.float32),
        grid_spec=pl.GridSpec(
            grid=(n_blocks,),
            in_specs=[
                # x: pipelined over the batch grid axis, read as f32.
                pl.BlockSpec((tb, in_size), lambda i: (i, 0)),
                # Weights / biases: constant index_map -> DMA'd once, resident.
                pl.BlockSpec((in_size, hidden_p), lambda i: (0, 0)),
                pl.BlockSpec((1, hidden_p), lambda i: (0, 0)),
                pl.BlockSpec((hidden_p, num_classes), lambda i: (0, 0)),
                pl.BlockSpec((1, num_classes), lambda i: (0, 0)),
            ],
            out_specs=pl.BlockSpec((tb, num_classes), lambda i: (i, 0)),
        ),
        compiler_params=pltpu.CompilerParams(
            dimension_semantics=("parallel",),   # batch tiles are independent
            vmem_limit_bytes=vmem_limit,
        ),
        cost_estimate=cost,
    )(x, w1b, b1p, w2b, b2p)


if __name__ == "__main__":
    # Small shapes consistent with the module's forward; batch chosen so the
    # grid splits into 2 steps (exercises pipelining / megacore sharding).
    batch = 256
    input_size = 64
    hidden_size = 32
    num_classes = 10

    key = jax.random.PRNGKey(0)
    kx, k1, k2, k3, k4 = jax.random.split(key, 5)

    x = jax.random.normal(kx, (batch, input_size), dtype=jnp.float32)

    # PyTorch-style uniform init bounds 1/sqrt(fan_in), stored as [in, out].
    bound1 = 1.0 / (input_size ** 0.5)
    w1 = jax.random.uniform(k1, (input_size, hidden_size),
                            minval=-bound1, maxval=bound1, dtype=jnp.float32)
    b1 = jax.random.uniform(k2, (hidden_size,),
                            minval=-bound1, maxval=bound1, dtype=jnp.float32)

    bound2 = 1.0 / (hidden_size ** 0.5)
    w2 = jax.random.uniform(k3, (hidden_size, num_classes),
                            minval=-bound2, maxval=bound2, dtype=jnp.float32)
    b2 = jax.random.uniform(k4, (num_classes,),
                            minval=-bound2, maxval=bound2, dtype=jnp.float32)

    out = neural_net2_forward(x, w1, b1, w2, b2)
    out = jax.block_until_ready(out)
    assert out.shape == (batch, num_classes)

    # Reference with the same bf16-operand / f32-accumulate numerics.
    xb = x.astype(jnp.bfloat16)
    w1r = w1.astype(jnp.bfloat16)
    w2r = w2.astype(jnp.bfloat16)
    h_ref = jnp.maximum(
        jnp.dot(xb, w1r, preferred_element_type=jnp.float32) + b1, 0.0)
    ref = jnp.dot(h_ref.astype(jnp.bfloat16), w2r,
                  preferred_element_type=jnp.float32) + b2
    assert jnp.allclose(out, ref, atol=2e-3, rtol=2e-3), (
        float(jnp.max(jnp.abs(out - ref))))

    # Loose sanity check against the pure-f32 math as well.
    ref_f32 = jnp.maximum(x @ w1 + b1, 0.0) @ w2 + b2
    assert jnp.allclose(out, ref_f32, atol=5e-2, rtol=5e-2)

    print("KERNEL_OK")
</pallas_src>

<mosaic_0001>
module attributes {stable_mosaic.version = 11 : i64} {
  func.func @mlp_kernel(%arg0: i32, %arg1: memref<128x64xf32, #tpu.memory_space<vmem>>, %arg2: memref<64x128xbf16, #tpu.memory_space<vmem>>, %arg3: memref<1x128xf32, #tpu.memory_space<vmem>>, %arg4: memref<128x10xbf16, #tpu.memory_space<vmem>>, %arg5: memref<1x10xf32, #tpu.memory_space<vmem>>, %arg6: memref<128x10xf32, #tpu.memory_space<vmem>>) attributes {dimension_semantics = [#tpu.dimension_semantics<parallel>], iteration_bounds = array<i64: 2>, scalar_prefetch = 0 : i64, scratch_operands = 0 : i64, tpu.core_type = #tpu.core_type<tc>, window_params = [{transform_indices = @transform_0, window_bounds = array<i64: 128, 64>}, {pipeline_mode = #tpu.pipeline_mode<synchronous>, transform_indices = @transform_1, window_bounds = array<i64: 64, 128>}, {pipeline_mode = #tpu.pipeline_mode<synchronous>, transform_indices = @transform_2, window_bounds = array<i64: 1, 128>}, {pipeline_mode = #tpu.pipeline_mode<synchronous>, transform_indices = @transform_3, window_bounds = array<i64: 128, 10>}, {pipeline_mode = #tpu.pipeline_mode<synchronous>, transform_indices = @transform_4, window_bounds = array<i64: 1, 10>}, {transform_indices = @transform_5, window_bounds = array<i64: 128, 10>}]} {
    %c0 = arith.constant 0 : index
    %c0_0 = arith.constant 0 : index
    %0 = vector.load %arg1[%c0, %c0_0] : memref<128x64xf32, #tpu.memory_space<vmem>>, vector<128x64xf32>
    %1 = arith.truncf %0 : vector<128x64xf32> to vector<128x64xbf16>
    %c0_1 = arith.constant 0 : index
    %c0_2 = arith.constant 0 : index
    %2 = vector.load %arg2[%c0_1, %c0_2] : memref<64x128xbf16, #tpu.memory_space<vmem>>, vector<64x128xbf16>
    %cst = arith.constant dense<0.000000e+00> : vector<128x128xf32>
    %3 = tpu.matmul %1, %2, %cst {dimension_numbers = #tpu.dot_dimension_numbers<[1], [0], [0], [1], [0, 0, 1, 1], [], []>} : vector<128x64xbf16>, vector<64x128xbf16>, vector<128x128xf32> -> vector<128x128xf32>
    %c0_3 = arith.constant 0 : index
    %c0_4 = arith.constant 0 : index
    %4 = vector.load %arg3[%c0_3, %c0_4] : memref<1x128xf32, #tpu.memory_space<vmem>>, vector<1x128xf32>
    %5 = vector.broadcast %4 : vector<1x128xf32> to vector<128x128xf32>
    %6 = arith.addf %3, %5 : vector<128x128xf32>
    %cst_5 = arith.constant 0.000000e+00 : f32
    %7 = vector.broadcast %cst_5 : f32 to vector<128x128xf32>
    %8 = arith.maximumf %6, %7 : vector<128x128xf32>
    %9 = arith.truncf %8 : vector<128x128xf32> to vector<128x128xbf16>
    %c0_6 = arith.constant 0 : index
    %c0_7 = arith.constant 0 : index
    %10 = vector.load %arg4[%c0_6, %c0_7] : memref<128x10xbf16, #tpu.memory_space<vmem>>, vector<128x10xbf16>
    %cst_8 = arith.constant dense<0.000000e+00> : vector<128x10xf32>
    %11 = tpu.matmul %9, %10, %cst_8 {dimension_numbers = #tpu.dot_dimension_numbers<[1], [0], [0], [1], [0, 0, 1, 1], [], []>} : vector<128x128xbf16>, vector<128x10xbf16>, vector<128x10xf32> -> vector<128x10xf32>
    %c0_9 = arith.constant 0 : index
    %c0_10 = arith.constant 0 : index
    %12 = vector.load %arg5[%c0_9, %c0_10] : memref<1x10xf32, #tpu.memory_space<vmem>>, vector<1x10xf32>
    %13 = vector.broadcast %12 : vector<1x10xf32> to vector<128x10xf32>
    %14 = arith.addf %11, %13 : vector<128x10xf32>
    %c0_11 = arith.constant 0 : index
    %c0_12 = arith.constant 0 : index
    %15 = vector.load %arg6[%c0_11, %c0_12] : memref<128x10xf32, #tpu.memory_space<vmem>>, vector<128x10xf32>
    tpu.vector_store %arg6[%c0_11, %c0_12], %14 {strides = array<i32>} : memref<128x10xf32, #tpu.memory_space<vmem>>, vector<128x10xf32>,
    return
  }
  func.func @transform_0(%arg0: i32) -> (i32, i32) {
    %c0_i32 = arith.constant 0 : i32
    %c0_i32_0 = arith.constant 0 : i32
    return %arg0, %c0_i32 : i32, i32
  }
  func.func @transform_1(%arg0: i32) -> (i32, i32) {
    %c0_i32 = arith.constant 0 : i32
    %c0_i32_0 = arith.constant 0 : i32
    %c0_i32_1 = arith.constant 0 : i32
    return %c0_i32, %c0_i32_0 : i32, i32
  }
  func.func @transform_2(%arg0: i32) -> (i32, i32) {
    %c0_i32 = arith.constant 0 : i32
    %c0_i32_0 = arith.constant 0 : i32
    %c0_i32_1 = arith.constant 0 : i32
    return %c0_i32, %c0_i32_0 : i32, i32
  }
  func.func @transform_3(%arg0: i32) -> (i32, i32) {
    %c0_i32 = arith.constant 0 : i32
    %c0_i32_0 = arith.constant 0 : i32
    %c0_i32_1 = arith.constant 0 : i32
    return %c0_i32, %c0_i32_0 : i32, i32
  }
  func.func @transform_4(%arg0: i32) -> (i32, i32) {
    %c0_i32 = arith.constant 0 : i32
    %c0_i32_0 = arith.constant 0 : i32
    %c0_i32_1 = arith.constant 0 : i32
    return %c0_i32, %c0_i32_0 : i32, i32
  }
  func.func @transform_5(%arg0: i32) -> (i32, i32) {
    %c0_i32 = arith.constant 0 : i32
    %c0_i32_0 = arith.constant 0 : i32
    return %arg0, %c0_i32 : i32, i32
  }
}

</mosaic_0001>

<bundles_post_ra>
// kernel: neural_net2_forward.1
= control target key start
LH: loop header
LB: loop body
LE: loop exit
PB: predicated region body
PF: predicated region fallthrough
CT: control target
= control target key end

     0   :  { %s716_s18 = smov 0   ;;  %s842_s0 = inlined_call_operand.vmem [shape: f32[256,64], index: 0, kind: input, shape index: {}]   ;;  %s843_s1 = inlined_call_operand.vmem [shape: bf16[64,128], index: 1, kind: input, shape index: {}]   ;;  %s844_s2 = inlined_call_operand.vmem [shape: f32[1,128], index: 2, kind: input, shape index: {}]   ;;  %s845_s3 = inlined_call_operand.vmem [shape: bf16[128,10], index: 3, kind: input, shape index: {}]   ;;  %s846_s4 = inlined_call_operand.vmem [shape: f32[1,10], index: 4, kind: input, shape index: {}]   ;;  %s847_s5 = inlined_call_operand.vmem [shape: f32[256,10], index: 5, kind: output, shape index: {}]  }
   0x1 LB: > { %s577_s19 = sadd.s32 4294967295, %s684_s18   ;;  %p581_p0 = scmp.ge.s32.totalorder %s684_s18, 1  ;;  %s684_s18 = sphi %s716_s18, %s15_s18  }
   0x2   : > { %p188_p1 = scmp.lt.s32.totalorder %s684_s18, 3 }
   0x4   : > { %p189_p2 = pnand %p581_p0, %p188_p1 }
   0x5   : > { %s582_s22 = sshll.u32 (!%p189_p2), %s577_s19, 4 }
   0x6   : > { %192 = sbr.rel (%p189_p2) target bundleno = 422 (0x1a6), region = 40  ;;  %p217_p3 = scmp.lt.s32.totalorder (!%p189_p2), %s582_s22, 31 }
   0xb   : > { %v647_v0 = vld [vmem:[%s843_s1 + $0x18] sm:$0xff]  ;;  %v646_v1 = vld [vmem:[%s843_s1 + $0x10] sm:$0xff]  ;;  %s849_s22 = smov (!%p217_p3, %s582_s22), 31  ;;  %v645_v2 = vld [vmem:[%s843_s1 + $0x8] sm:$0xff]  ;;  %vm289_vm0 = vcmask 523264   ;;  %vm504_vm1 = vcmask 80896  }
   0xc   : > { %318 = vmatpush.bf16.msra.mxu0 %v647_v0  ;;  %656 = vmatpush.bf16.msra.mxu3 %v647_v0  ;;  %s583_s25 = sshll.u32 %s849_s22, 3  ;;  %v644_v3 = vld [vmem:[%s843_s1] sm:$0xff]  ;;  %v655_v16 = vld [vmem:[%s845_s3 + $0x38] sm:$0xff]  ;;  %v654_v17 = vld [vmem:[%s845_s3 + $0x30] sm:$0xff] }
   0xd   : > { %s741_s30 = scalar_lea.vmem %s842_s0, %s583_s25  ;;  %455 = vmatpush.bf16.msra.mxu1 %v655_v16  ;;  %660 = vmatpush.bf16.msra.mxu2 %v655_v16  ;;  %v653_v18 = vld [vmem:[%s845_s3 + $0x28] sm:$0xff]  ;;  %v652_v24 = vld [vmem:[%s845_s3 + $0x20] sm:$0xff]  ;;  %v651_v32 = vld [vmem:[%s845_s3 + $0x18] sm:$0xff]  ;;  %s805_s8 = scalar_lea.vmem %s847_s5, %s583_s25 }
   0xe   : > { %v229_v4 = vld [vmem:[%s741_s30] sm:$0xff]  ;;  %v230_v5 = vld [vmem:[%s741_s30 + $0x8] sm:$0xff]  ;;  %v231_v7 = vld [vmem:[%s741_s30 + $0x10] sm:$0xff] }
   0xf   : > { %v245_v6 = vpack.c.bf16 %v230_v5, %v229_v4  ;;  %v232_v8 = vld [vmem:[%s741_s30 + $0x18] sm:$0xff]  ;;  %v233_v10 = vld [vmem:[%s741_s30 + $0x20] sm:$0xff]  ;;  %v234_v11 = vld [vmem:[%s741_s30 + $0x28] sm:$0xff] }
  0x10   : > { %319 = vmatpush.bf16.msra.mxu0 %v646_v1  ;;  %657 = vmatpush.bf16.msra.mxu3 %v646_v1  ;;  %v246_v9 = vpack.c.bf16 %v232_v8, %v231_v7  ;;  %v247_v12 = vpack.c.bf16 %v234_v11, %v233_v10  ;;  %v239_v13 = vld [vmem:[%s741_s30 + $0x50] sm:$0xff]  ;;  %v240_v14 = vld [vmem:[%s741_s30 + $0x58] sm:$0xff]  ;;  %v241_v21 = vld [vmem:[%s741_s30 + $0x60] sm:$0xff] }
  0x11   : > { %v250_v15 = vpack.c.bf16 %v240_v14, %v239_v13  ;;  %456 = vmatpush.bf16.msra.mxu1 %v654_v17  ;;  %661 = vmatpush.bf16.msra.mxu2 %v654_v17  ;;  %v235_v19 = vld [vmem:[%s741_s30 + $0x30] sm:$0xff]  ;;  %v236_v20 = vld [vmem:[%s741_s30 + $0x38] sm:$0xff]  ;;  %v242_v22 = vld [vmem:[%s741_s30 + $0x68] sm:$0xff] }
  0x12   : > { %v248_v23 = vpack.c.bf16 %v236_v20, %v235_v19  ;;  %v251_v25 = vpack.c.bf16 %v242_v22, %v241_v21  ;;  %v237_v26 = vld [vmem:[%s741_s30 + $0x40] sm:$0xff]  ;;  %v238_v27 = vld [vmem:[%s741_s30 + $0x48] sm:$0xff]  ;;  %v243_v28 = vld [vmem:[%s741_s30 + $0x70] sm:$0xff] }
  0x13   : > { %v244_v29 = vld [vmem:[%s741_s30 + $0x78] sm:$0xff]  ;;  %v249_v30 = vpack.c.bf16 %v238_v27, %v237_v26  ;;  %v650_v33 = vld [vmem:[%s845_s3 + $0x10] sm:$0xff]  ;;  %v649_v34 = vld [vmem:[%s845_s3 + $0x8] sm:$0xff] }
  0x14   : > { %320 = vmatpush.bf16.msra.mxu0 %v645_v2  ;;  %658 = vmatpush.bf16.msra.mxu3 %v645_v2  ;;  %v252_v31 = vpack.c.bf16 %v244_v29, %v243_v28  ;;  %v648_v35 = vld [vmem:[%s845_s3] sm:$0xff] }
  0x15   : > { %457 = vmatpush.bf16.msra.mxu1 %v653_v18  ;;  %662 = vmatpush.bf16.msra.mxu2 %v653_v18  ;;  %v676_v37 = vld [vmem:[%s844_s2] ss:$0 sm:$0xff] }
  0x16   : > { %v677_v29 = vld [vmem:[%s846_s4] ss:$0 sm:$0xff] }
  0x18   : > { %321 = vmatpush.bf16.msra.mxu0 %v644_v3  ;;  %659 = vmatpush.bf16.msra.mxu3 %v644_v3 }
  0x19   : > { %458 = vmatpush.bf16.msra.mxu1 %v652_v24  ;;  %663 = vmatpush.bf16.msra.mxu2 %v652_v24 }
  0x1b   : > { %602 = vmatmul.msk.bf16.vlgmr.msra.gmra.mxu0 %vm289_vm0, %v245_v6  ;;  %607 = vmatmul.msk.bf16.vlgmr.msra.gmra.mxu3 %vm289_vm0, %v250_v15 }
  0x1d   : > { %459 = vmatpush.bf16.msra.mxu1 %v651_v32  ;;  %664 = vmatpush.bf16.msra.mxu2 %v651_v32 }
  0x21   : > { %460 = vmatpush.bf16.msra.mxu1 %v650_v33  ;;  %665 = vmatpush.bf16.msra.mxu2 %v650_v33 }
  0x25   : > { %461 = vmatpush.bf16.msra.mxu1 %v649_v34  ;;  %666 = vmatpush.bf16.msra.mxu2 %v649_v34 }
  0x29   : > { %462 = vmatpush.bf16.msra.mxu1 %v648_v35  ;;  %667 = vmatpush.bf16.msra.mxu2 %v648_v35 }
  0x2b   : > { %603 = vmatmul.msk.bf16.gmra.mxu0 %vm289_vm0, %v246_v9  ;;  %608 = vmatmul.msk.bf16.gmra.mxu3 %vm289_vm0, %v251_v25 }
  0x3b   : > { %604 = vmatmul.msk.bf16.gmra.mxu0 %vm289_vm0, %v247_v12  ;;  %609 = vmatmul.msk.bf16.gmra.mxu3 %vm289_vm0, %v252_v31 }
  0x4b   : > { %605 = vmatmul.msk.bf16.gmra.mxu0 %vm289_vm0, %v248_v23 }
  0x5b   : > { %606 = vmatmul.msk.bf16.gmra.mxu0 %vm289_vm0, %v249_v30 }
  0x98   : > { %v323_v36 = vpop.f32.mrf.mxu0 }
  0x99   : > { %v324_v38 = vadd.f32 %v676_v37, %v323_v36 }
  0x9b   : > { %v363_v41 = vmax.f32 %v324_v38, 0.0 }
  0x9e   : > { %v348_v2 = vpop.f32.mrf.mxu3 }
  0x9f   : > { %v349_v11 = vadd.f32 %v676_v37, %v348_v2 }
  0xa0   : > { %v325_v39 = vpop.f32.mrf.mxu0 }
  0xa1   : > { %v326_v40 = vadd.f32 %v676_v37, %v325_v39  ;;  %v373_v13 = vmax.f32 %v349_v11, 0.0 }
  0xa3   : > { %v364_v42 = vmax.f32 %v326_v40, 0.0 }
  0xa5   : > { %v379_v43 = vpack.c.bf16 %v364_v42, %v363_v41 }
  0xa6   : > { %v350_v6 = vpop.f32.mrf.mxu3 }
  0xa7   : > { %463 = vmatmul.bf16.vlgmr.msra.gmra.mxu1 %v379_v43  ;;  %v351_v12 = vadd.f32 %v676_v37, %v350_v6 }
  0xa8   : > { %v328_v44 = vpop.f32.mrf.mxu0 }
  0xa9   : > { %v329_v45 = vadd.f32 %v676_v37, %v328_v44  ;;  %v374_v14 = vmax.f32 %v351_v12, 0.0 }
  0xab   : > { %v365_v48 = vmax.f32 %v329_v45, 0.0  ;;  %v384_v15 = vpack.c.bf16 %v374_v14, %v373_v13 }
  0xae   : > { %v353_v10 = vpop.f32.mrf.mxu3 }
  0xaf   : > { %v354_v17 = vadd.f32 %v676_v37, %v353_v10 }
  0xb0   : > { %v330_v46 = vpop.f32.mrf.mxu0 }
  0xb1   : > { %v331_v47 = vadd.f32 %v676_v37, %v330_v46  ;;  %v375_v20 = vmax.f32 %v354_v17, 0.0 }
  0xb3   : > { %v366_v49 = vmax.f32 %v331_v47, 0.0 }
  0xb5   : > { %v380_v50 = vpack.c.bf16 %v366_v49, %v365_v48 }
  0xb6   : > { %v355_v16 = vpop.f32.mrf.mxu3 }
  0xb7   : > { %468 = vmatmul.bf16.gmra.mxu1 %v380_v50  ;;  %v356_v18 = vadd.f32 %v676_v37, %v355_v16 }
  0xb8   : > { %v333_v51 = vpop.f32.mrf.mxu0 }
  0xb9   : > { %v334_v52 = vadd.f32 %v676_v37, %v333_v51  ;;  %v376_v21 = vmax.f32 %v356_v18, 0.0 }
  0xbb   : > { %v367_v55 = vmax.f32 %v334_v52, 0.0  ;;  %v385_v22 = vpack.c.bf16 %v376_v21, %v375_v20 }
  0xbe   : > { %v358_v19 = vpop.f32.mrf.mxu3 }
  0xbf   : > { %v359_v24 = vadd.f32 %v676_v37, %v358_v19 }
  0xc0   : > { %v335_v53 = vpop.f32.mrf.mxu0 }
  0xc1   : > { %v336_v54 = vadd.f32 %v676_v37, %v335_v53  ;;  %v377_v26 = vmax.f32 %v359_v24, 0.0 }
  0xc3   : > { %v368_v56 = vmax.f32 %v336_v54, 0.0 }
  0xc5   : > { %v381_v57 = vpack.c.bf16 %v368_v56, %v367_v55 }
  0xc6   : > { %v360_v23 = vpop.f32.mrf.mxu3 }
  0xc7   : > { %473 = vmatmul.bf16.gmra.mxu1 %v381_v57  ;;  %v361_v25 = vadd.f32 %v676_v37, %v360_v23 }
  0xc8   : > { %v338_v58 = vpop.f32.mrf.mxu0 }
  0xc9   : > { %v339_v59 = vadd.f32 %v676_v37, %v338_v58  ;;  %v378_v27 = vmax.f32 %v361_v25, 0.0 }
  0xcb   : > { %v369_v62 = vmax.f32 %v339_v59, 0.0  ;;  %v386_v28 = vpack.c.bf16 %v378_v27, %v377_v26 }
  0xd0   : > { %v340_v60 = vpop.f32.mrf.mxu0 }
  0xd1   : > { %v341_v61 = vadd.f32 %v676_v37, %v340_v60 }
  0xd3   : > { %v370_v63 = vmax.f32 %v341_v61, 0.0 }
  0xd5   : > { %v382_v0 = vpack.c.bf16 %v370_v63, %v369_v62 }
  0xd7   : > { %478 = vmatmul.bf16.gmra.mxu1 %v382_v0 }
  0xd8   : > { %v343_v1 = vpop.f32.mrf.mxu0 }
  0xd9   : > { %v344_v3 = vadd.f32 %v676_v37, %v343_v1 }
  0xdb   : > { %v371_v7 = vmax.f32 %v344_v3, 0.0 }
  0xe0   : > { %v345_v4 = vpop.f32.mrf.mxu0 }
  0xe1   : > { %v346_v5 = vadd.f32 %v676_v37, %v345_v4 }
  0xe3   : > { %v372_v8 = vmax.f32 %v346_v5, 0.0 }
  0xe5   : > { %v383_v9 = vpack.c.bf16 %v372_v8, %v371_v7 }
  0xe7   : > { %483 = vmatmul.bf16.vlgmr.msra.gmra.mxu2 %v383_v9 }
  0xf7   : > { %488 = vmatmul.bf16.gmra.mxu2 %v384_v15 }
 0x107   : > { %493 = vmatmul.bf16.gmra.mxu2 %v385_v22 }
 0x117   : > { %498 = vmatmul.bf16.gmra.mxu2 %v386_v28 }
 0x124   : > { %v464_v30 = vpop.f32.mrf.mxu1 }
 0x125   : > { %v465_v31 = vadd.f32 %v677_v29, %v464_v30 }
 0x127   : > { %505 = vst.msk [vmem:[%s805_s8] sm:$0xff] %vm504_vm1, %v465_v31 }
 0x12c   : > { %v466_v32 = vpop.f32.mrf.mxu1 }
 0x12d   : > { %v467_v33 = vadd.f32 %v677_v29, %v466_v32 }
 0x12f   : > { %506 = vst.msk [vmem:[%s805_s8 + $0x8] sm:$0xff] %vm504_vm1, %v467_v33 }
 0x134   : > { %v469_v34 = vpop.f32.mrf.mxu1 }
 0x135   : > { %v470_v35 = vadd.f32 %v677_v29, %v469_v34 }
 0x137   : > { %507 = vst.msk [vmem:[%s805_s8 + $0x10] sm:$0xff] %vm504_vm1, %v470_v35 }
 0x13c   : > { %v471_v36 = vpop.f32.mrf.mxu1 }
 0x13d   : > { %v472_v37 = vadd.f32 %v677_v29, %v471_v36 }
 0x13f   : > { %508 = vst.msk [vmem:[%s805_s8 + $0x18] sm:$0xff] %vm504_vm1, %v472_v37 }
 0x144   : > { %v474_v38 = vpop.f32.mrf.mxu1 }
 0x145   : > { %v475_v39 = vadd.f32 %v677_v29, %v474_v38 }
 0x147   : > { %509 = vst.msk [vmem:[%s805_s8 + $0x20] sm:$0xff] %vm504_vm1, %v475_v39 }
 0x14c   : > { %v476_v40 = vpop.f32.mrf.mxu1 }
 0x14d   : > { %v477_v41 = vadd.f32 %v677_v29, %v476_v40 }
 0x14f   : > { %510 = vst.msk [vmem:[%s805_s8 + $0x28] sm:$0xff] %vm504_vm1, %v477_v41 }
 0x154   : > { %v479_v42 = vpop.f32.mrf.mxu1 }
 0x155   : > { %v480_v43 = vadd.f32 %v677_v29, %v479_v42 }
 0x157   : > { %511 = vst.msk [vmem:[%s805_s8 + $0x30] sm:$0xff] %vm504_vm1, %v480_v43 }
 0x15c   : > { %v481_v44 = vpop.f32.mrf.mxu1 }
 0x15d   : > { %v482_v45 = vadd.f32 %v677_v29, %v481_v44 }
 0x15f   : > { %512 = vst.msk [vmem:[%s805_s8 + $0x38] sm:$0xff] %vm504_vm1, %v482_v45 }
 0x16a   : > { %v484_v46 = vpop.f32.mrf.mxu2 }
 0x16b   : > { %v485_v47 = vadd.f32 %v677_v29, %v484_v46 }
 0x16d   : > { %513 = vst.msk [vmem:[%s805_s8 + $0x40] sm:$0xff] %vm504_vm1, %v485_v47 }
 0x172   : > { %v486_v48 = vpop.f32.mrf.mxu2 }
 0x173   : > { %v487_v49 = vadd.f32 %v677_v29, %v486_v48 }
 0x175   : > { %514 = vst.msk [vmem:[%s805_s8 + $0x48] sm:$0xff] %vm504_vm1, %v487_v49 }
 0x17a   : > { %v489_v50 = vpop.f32.mrf.mxu2 }
 0x17b   : > { %v490_v51 = vadd.f32 %v677_v29, %v489_v50 }
 0x17d   : > { %515 = vst.msk [vmem:[%s805_s8 + $0x50] sm:$0xff] %vm504_vm1, %v490_v51 }
 0x182   : > { %v491_v52 = vpop.f32.mrf.mxu2 }
 0x183   : > { %v492_v53 = vadd.f32 %v677_v29, %v491_v52 }
 0x185   : > { %516 = vst.msk [vmem:[%s805_s8 + $0x58] sm:$0xff] %vm504_vm1, %v492_v53 }
 0x18a   : > { %v494_v54 = vpop.f32.mrf.mxu2 }
 0x18b   : > { %v495_v55 = vadd.f32 %v677_v29, %v494_v54 }
 0x18d   : > { %517 = vst.msk [vmem:[%s805_s8 + $0x60] sm:$0xff] %vm504_vm1, %v495_v55 }
 0x192   : > { %v496_v56 = vpop.f32.mrf.mxu2 }
 0x193   : > { %v497_v57 = vadd.f32 %v677_v29, %v496_v56 }
 0x195   : > { %518 = vst.msk [vmem:[%s805_s8 + $0x68] sm:$0xff] %vm504_vm1, %v497_v57 }
 0x19a   : > { %v499_v58 = vpop.f32.mrf.mxu2 }
 0x19b   : > { %v500_v59 = vadd.f32 %v677_v29, %v499_v58 }
 0x19d   : > { %519 = vst.msk [vmem:[%s805_s8 + $0x70] sm:$0xff] %vm504_vm1, %v500_v59 }
 0x1a2   : > { %v501_v60 = vpop.f32.mrf.mxu2 }
 0x1a3   : > { %v502_v61 = vadd.f32 %v677_v29, %v501_v60 }
 0x1a5   : > { %520 = vst.msk [vmem:[%s805_s8 + $0x78] sm:$0xff] %vm504_vm1, %v502_v61 }
 0x1a6 PF: > { %s15_s18 = sadd.s32 1, %s684_s18  }
 0x1a7   : > { %p12_p4 = scmp.ge.s32.totalorder %s15_s18, 4  }
 0x1a9   :  { %14 = sbr.rel (!%p12_p4) target bundleno = 1 (0x1), region = 70 }

</bundles_post_ra>
